<compile_context>
chip_gen: v7x
topology: tpu7x:2x2x1
jax: 0.10.0
libtpu: 0.0.40
codegen_flags: <defaults>
</compile_context>

<pallas_src>
import functools

import jax
import jax.numpy as jnp
import numpy as np
from jax.experimental import pallas as pl
from jax.experimental.pallas import tpu as pltpu


def _cdiv(a, b):
    return -(-a // b)


def _round_up(x, m):
    return _cdiv(x, m) * m


def _output_layer_kernel(x_ref, w1_ref, b1_ref, w2_ref, b2_ref, o_ref, *,
                         time_pack):
    # x_ref : (TB, T, tn, F)  raw input tile (permute folded into the BlockSpec)
    # w1_ref: (K=T*F, H)      compute dtype (f32 or bf16), VMEM-resident
    # b1_ref: (1, H)  f32
    # w2_ref: (1, H)  f32
    # b2_ref: (1,)    f32 scalar in SMEM
    # o_ref : (TB, tn, 1)     output tile ([B, N, 1] layout; wrapper swaps axes)
    tb, t_steps, tn, f = x_ref.shape
    rows = tb * tn
    cdtype = w1_ref.dtype

    if time_pack:
        # Lane-concatenate the T time slices -> one full-depth K = T*F matmul.
        # Concat order (t-major, f-minor) matches w1's row order k = t*F + f.
        xs = [x_ref[:, t] for t in range(t_steps)]            # each (TB, tn, F)
        xk = jnp.concatenate(xs, axis=-1)                      # (TB, tn, K)
        xk = xk.reshape(rows, t_steps * f).astype(cdtype)      # leading-dim merge
        acc = jnp.dot(xk, w1_ref[...],
                      preferred_element_type=jnp.float32)      # (rows, H)  MXU
    else:
        # Safe fallback: T shallow K=F matmuls accumulated in f32.
        acc = None
        for t in range(t_steps):
            xt = x_ref[:, t].reshape(rows, f).astype(cdtype)
            wt = w1_ref[t * f:(t + 1) * f, :]
            p = jnp.dot(xt, wt, preferred_element_type=jnp.float32)
            acc = p if acc is None else acc + p

    h = jnp.maximum(acc + b1_ref[...], 0.0)                    # (rows, H)  VPU
    y = jnp.sum(h * w2_ref[...], axis=-1, keepdims=True)       # (rows, 1)  VPU+XLU
    y = (y + b2_ref[0]).astype(o_ref.dtype)                    # (rows, 1)

    if tb == 1:
        o_ref[...] = y[None]                                   # (1, tn, 1)
    else:
        for b in range(tb):                                    # small static unroll
            o_ref[b] = y[b * tn:(b + 1) * tn, :]


def _choose_tiles(batch, t_steps, nodes, feat, x_itemsize):
    """Pick (TB, tn) so each grid step has ~512-2048 effective matmul rows while
    the double-buffered, lane-padded x tile stays well under every chip's
    scoped-VMEM default (16 MiB on v5e, 32 MiB on v6e/v7x)."""
    k = t_steps * feat
    rows_target = min(1024, max(128, (4 * 1024 * 1024) // (4 * k)))
    x_buf_budget = 6 * 1024 * 1024          # per pipeline buffer (x2 double-buffered)

    # Node tile: full N when modest (block dim == array dim is always legal);
    # otherwise a lane/sublane-friendly 512, tail handled by the cdiv grid.
    tn = nodes if nodes <= 512 else 512

    # Bytes of one x block per batch element: minor dim pads to 128 lanes,
    # second-minor (tn) pads to 8 sublanes.
    per_batch_bytes = t_steps * _round_up(tn, 8) * _round_up(feat, 128) * x_itemsize
    tb = max(1, min(batch,
                    _cdiv(rows_target, tn),
                    max(1, x_buf_budget // per_batch_bytes),
                    32))                     # bound in-kernel store unrolling
    # v7x has 2 TensorCores: keep >= 2 parallel grid steps whenever possible.
    if _cdiv(batch, tb) * _cdiv(nodes, tn) < 2 and batch > 1:
        tb = _cdiv(batch, 2)
    return tb, tn


@functools.partial(jax.jit, static_argnames=("compute_dtype", "time_pack"))
def output_layer_pallas(data, w1, b1, w2, b2, *, compute_dtype=None,
                        time_pack=True):
    """STSGCN output_layer forward.

    data: [B, T, N, F] (T == input_length, F == nhid)
    w1:   [T*F, 128]   (== fully_1.weight[:, :, 0, 0].T)
    b1:   [128]
    w2:   [128]        (== fully_2.weight[0, :, 0, 0])
    b2:   [] scalar    (== fully_2.bias[0])
    compute_dtype: MXU operand dtype; None keeps the input dtype (exact f32
        semantics).  jnp.bfloat16 halves MXU cost (f32 accumulation) with a
        small numeric deviation vs the f32 PyTorch reference.
    returns [B, 1, N] float32
    """
    B, T, N, F = data.shape
    K = T * F
    H = w1.shape[1]
    assert w1.shape == (K, H), (w1.shape, (K, H))
    if compute_dtype is None:
        compute_dtype = data.dtype

    TB, tn = _choose_tiles(B, T, N, F, data.dtype.itemsize)
    grid = (_cdiv(B, TB), _cdiv(N, tn))   # node axis innermost: contiguous HBM reads

    # One-time, tiny parameter layout plumbing.
    w1_c = w1.astype(compute_dtype)                        # (K, H), VMEM-resident
    b1_c = b1.reshape(1, H).astype(jnp.float32)
    w2_c = w2.reshape(1, H).astype(jnp.float32)
    b2_s = jnp.asarray(b2, jnp.float32).reshape(1)

    kernel = functools.partial(_output_layer_kernel, time_pack=time_pack)

    out_bn1 = pl.pallas_call(
        kernel,
        out_shape=jax.ShapeDtypeStruct((B, N, 1), jnp.float32),
        grid=grid,
        in_specs=[
            pl.BlockSpec((TB, T, tn, F), lambda bi, ni: (bi, 0, ni, 0)),
            pl.BlockSpec((K, H), lambda bi, ni: (0, 0)),
            pl.BlockSpec((1, H), lambda bi, ni: (0, 0)),
            pl.BlockSpec((1, H), lambda bi, ni: (0, 0)),
            pl.BlockSpec(memory_space=pltpu.MemorySpace.SMEM),
        ],
        out_specs=pl.BlockSpec((TB, tn, 1), lambda bi, ni: (bi, ni, 0)),
        compiler_params=pltpu.CompilerParams(
            dimension_semantics=("parallel", "parallel"),
            vmem_limit_bytes=32 * 1024 * 1024),
    )(data, w1_c, b1_c, w2_c, b2_s)

    # Free, tiny [B, N, 1] -> [B, 1, N] swap (matches PyTorch's squeeze(3) output).
    return jnp.swapaxes(out_bn1, 1, 2)


if __name__ == "__main__":
    # Small, module-consistent shapes: input_length=T=8, nhid=32 -> K=256, H=128.
    B, T, N, nhid = 2, 8, 16, 32
    K, H = T * nhid, 128

    key = jax.random.PRNGKey(0)
    k_data, k_w1, k_b1, k_w2, k_b2 = jax.random.split(key, 5)

    data = jax.random.normal(k_data, (B, T, N, nhid), dtype=jnp.float32)
    # Matmul-ready views of the PyTorch 1x1-conv parameters.
    w1 = jax.random.normal(k_w1, (K, H), dtype=jnp.float32) * 0.05
    b1 = jax.random.normal(k_b1, (H,), dtype=jnp.float32) * 0.05
    w2 = jax.random.normal(k_w2, (H,), dtype=jnp.float32) * 0.05
    b2 = jax.random.normal(k_b2, (), dtype=jnp.float32) * 0.05

    # Pure-JAX reference of the same semantics.
    x_rows = jnp.transpose(data, (0, 2, 1, 3)).reshape(B * N, K)
    h_ref = jnp.maximum(x_rows @ w1 + b1[None, :], 0.0)
    y_ref = (h_ref @ w2[:, None] + b2).reshape(B, N)[:, None, :]

    def run(**kw):
        return jax.block_until_ready(
            output_layer_pallas(data, w1, b1, w2, b2, **kw))

    # Exact f32 path (default).  If this Mosaic build cannot lower the unaligned
    # lane-concatenation used for K-packing, fall back to per-t matmuls.
    try:
        out = run()
    except Exception:  # pragma: no cover - older Mosaic builds only
        out = run(time_pack=False)
    assert out.shape == (B, 1, N), out.shape
    np.testing.assert_allclose(np.asarray(out), np.asarray(y_ref),
                               rtol=1e-5, atol=1e-5)

    # Perf-recommended bf16 MXU path (f32 accumulation), relaxed tolerance.
    try:
        out_bf16 = run(compute_dtype=jnp.bfloat16)
    except Exception:  # pragma: no cover - older Mosaic builds only
        out_bf16 = run(compute_dtype=jnp.bfloat16, time_pack=False)
    np.testing.assert_allclose(np.asarray(out_bf16), np.asarray(y_ref),
                               rtol=3e-2, atol=3e-2)

    print("KERNEL_OK")
</pallas_src>

<mosaic_0001>
module attributes {stable_mosaic.version = 11 : i64} {
  func.func @_output_layer_kernel(%arg0: i32, %arg1: i32, %arg2: memref<1x8x16x32xf32, #tpu.memory_space<vmem>>, %arg3: memref<256x128xf32, #tpu.memory_space<vmem>>, %arg4: memref<1x128xf32, #tpu.memory_space<vmem>>, %arg5: memref<1x128xf32, #tpu.memory_space<vmem>>, %arg6: memref<1xf32, #tpu.memory_space<smem>>, %arg7: memref<1x16x1xf32, #tpu.memory_space<vmem>>) attributes {dimension_semantics = [#tpu.dimension_semantics<parallel>, #tpu.dimension_semantics<parallel>], iteration_bounds = array<i64: 2, 1>, scalar_prefetch = 0 : i64, scratch_operands = 0 : i64, tpu.core_type = #tpu.core_type<tc>, window_params = [{transform_indices = @transform_0, window_bounds = array<i64: 1, 8, 16, 32>}, {pipeline_mode = #tpu.pipeline_mode<synchronous>, transform_indices = @transform_1, window_bounds = array<i64: 256, 128>}, {pipeline_mode = #tpu.pipeline_mode<synchronous>, transform_indices = @transform_2, window_bounds = array<i64: 1, 128>}, {pipeline_mode = #tpu.pipeline_mode<synchronous>, transform_indices = @transform_3, window_bounds = array<i64: 1, 128>}, {transform_indices = @transform_4, window_bounds = array<i64: 1>}, {transform_indices = @transform_5, window_bounds = array<i64: 1, 16, 1>}]} {
    %c0 = arith.constant 0 : index
    %c0_0 = arith.constant 0 : index
    %c0_1 = arith.constant 0 : index
    %c0_2 = arith.constant 0 : index
    %0 = vector.load %arg2[%c0, %c0_0, %c0_1, %c0_2] : memref<1x8x16x32xf32, #tpu.memory_space<vmem>>, vector<1x1x16x32xf32>
    %1 = vector.shape_cast %0 : vector<1x1x16x32xf32> to vector<1x16x32xf32>
    %c0_3 = arith.constant 0 : index
    %c1 = arith.constant 1 : index
    %c0_4 = arith.constant 0 : index
    %c0_5 = arith.constant 0 : index
    %2 = vector.load %arg2[%c0_3, %c1, %c0_4, %c0_5] : memref<1x8x16x32xf32, #tpu.memory_space<vmem>>, vector<1x1x16x32xf32>
    %3 = vector.shape_cast %2 : vector<1x1x16x32xf32> to vector<1x16x32xf32>
    %c0_6 = arith.constant 0 : index
    %c2 = arith.constant 2 : index
    %c0_7 = arith.constant 0 : index
    %c0_8 = arith.constant 0 : index
    %4 = vector.load %arg2[%c0_6, %c2, %c0_7, %c0_8] : memref<1x8x16x32xf32, #tpu.memory_space<vmem>>, vector<1x1x16x32xf32>
    %5 = vector.shape_cast %4 : vector<1x1x16x32xf32> to vector<1x16x32xf32>
    %c0_9 = arith.constant 0 : index
    %c3 = arith.constant 3 : index
    %c0_10 = arith.constant 0 : index
    %c0_11 = arith.constant 0 : index
    %6 = vector.load %arg2[%c0_9, %c3, %c0_10, %c0_11] : memref<1x8x16x32xf32, #tpu.memory_space<vmem>>, vector<1x1x16x32xf32>
    %7 = vector.shape_cast %6 : vector<1x1x16x32xf32> to vector<1x16x32xf32>
    %c0_12 = arith.constant 0 : index
    %c4 = arith.constant 4 : index
    %c0_13 = arith.constant 0 : index
    %c0_14 = arith.constant 0 : index
    %8 = vector.load %arg2[%c0_12, %c4, %c0_13, %c0_14] : memref<1x8x16x32xf32, #tpu.memory_space<vmem>>, vector<1x1x16x32xf32>
    %9 = vector.shape_cast %8 : vector<1x1x16x32xf32> to vector<1x16x32xf32>
    %c0_15 = arith.constant 0 : index
    %c5 = arith.constant 5 : index
    %c0_16 = arith.constant 0 : index
    %c0_17 = arith.constant 0 : index
    %10 = vector.load %arg2[%c0_15, %c5, %c0_16, %c0_17] : memref<1x8x16x32xf32, #tpu.memory_space<vmem>>, vector<1x1x16x32xf32>
    %11 = vector.shape_cast %10 : vector<1x1x16x32xf32> to vector<1x16x32xf32>
    %c0_18 = arith.constant 0 : index
    %c6 = arith.constant 6 : index
    %c0_19 = arith.constant 0 : index
    %c0_20 = arith.constant 0 : index
    %12 = vector.load %arg2[%c0_18, %c6, %c0_19, %c0_20] : memref<1x8x16x32xf32, #tpu.memory_space<vmem>>, vector<1x1x16x32xf32>
    %13 = vector.shape_cast %12 : vector<1x1x16x32xf32> to vector<1x16x32xf32>
    %c0_21 = arith.constant 0 : index
    %c7 = arith.constant 7 : index
    %c0_22 = arith.constant 0 : index
    %c0_23 = arith.constant 0 : index
    %14 = vector.load %arg2[%c0_21, %c7, %c0_22, %c0_23] : memref<1x8x16x32xf32, #tpu.memory_space<vmem>>, vector<1x1x16x32xf32>
    %15 = vector.shape_cast %14 : vector<1x1x16x32xf32> to vector<1x16x32xf32>
    %16 = tpu.concatenate %1, %3, %5, %7, %9, %11, %13, %15 in 2 : vector<1x16x32xf32>, vector<1x16x32xf32>, vector<1x16x32xf32>, vector<1x16x32xf32>, vector<1x16x32xf32>, vector<1x16x32xf32>, vector<1x16x32xf32>, vector<1x16x32xf32> -> vector<1x16x256xf32>
    %17 = vector.shape_cast %16 : vector<1x16x256xf32> to vector<16x256xf32>
    %c0_24 = arith.constant 0 : index
    %c0_25 = arith.constant 0 : index
    %18 = vector.load %arg3[%c0_24, %c0_25] : memref<256x128xf32, #tpu.memory_space<vmem>>, vector<256x128xf32>
    %cst = arith.constant dense<0.000000e+00> : vector<16x128xf32>
    %19 = tpu.matmul %17, %18, %cst {dimension_numbers = #tpu.dot_dimension_numbers<[1], [0], [0], [1], [0, 0, 1, 1], [], []>} : vector<16x256xf32>, vector<256x128xf32>, vector<16x128xf32> -> vector<16x128xf32>
    %c0_26 = arith.constant 0 : index
    %c0_27 = arith.constant 0 : index
    %20 = vector.load %arg4[%c0_26, %c0_27] : memref<1x128xf32, #tpu.memory_space<vmem>>, vector<1x128xf32>
    %21 = vector.broadcast %20 : vector<1x128xf32> to vector<16x128xf32>
    %22 = arith.addf %19, %21 : vector<16x128xf32>
    %cst_28 = arith.constant 0.000000e+00 : f32
    %23 = vector.broadcast %cst_28 : f32 to vector<16x128xf32>
    %24 = arith.maximumf %22, %23 : vector<16x128xf32>
    %c0_29 = arith.constant 0 : index
    %c0_30 = arith.constant 0 : index
    %25 = vector.load %arg5[%c0_29, %c0_30] : memref<1x128xf32, #tpu.memory_space<vmem>>, vector<1x128xf32>
    %26 = vector.broadcast %25 : vector<1x128xf32> to vector<16x128xf32>
    %27 = arith.mulf %24, %26 : vector<16x128xf32>
    %cst_31 = arith.constant dense<0.000000e+00> : vector<16xf32>
    %28 = vector.multi_reduction <add>, %27, %cst_31 [1] : vector<16x128xf32> to vector<16xf32>
    %29 = vector.shape_cast %28 : vector<16xf32> to vector<16x1xf32>
    %c0_32 = arith.constant 0 : index
    %30 = memref.load %arg6[%c0_32] : memref<1xf32, #tpu.memory_space<smem>>
    %31 = vector.broadcast %30 : f32 to vector<16x1xf32>
    %32 = arith.addf %29, %31 : vector<16x1xf32>
    %33 = vector.shape_cast %32 : vector<16x1xf32> to vector<1x16x1xf32>
    %c0_33 = arith.constant 0 : index
    %c0_34 = arith.constant 0 : index
    %c0_35 = arith.constant 0 : index
    %34 = vector.load %arg7[%c0_33, %c0_34, %c0_35] : memref<1x16x1xf32, #tpu.memory_space<vmem>>, vector<1x16x1xf32>
    tpu.vector_store %arg7[%c0_33, %c0_34, %c0_35], %33 {strides = array<i32>} : memref<1x16x1xf32, #tpu.memory_space<vmem>>, vector<1x16x1xf32>,
    return
  }
  func.func @transform_0(%arg0: i32, %arg1: i32) -> (i32, i32, i32, i32) {
    %c0_i32 = arith.constant 0 : i32
    %c0_i32_0 = arith.constant 0 : i32
    %c0_i32_1 = arith.constant 0 : i32
    return %arg0, %c0_i32, %arg1, %c0_i32_0 : i32, i32, i32, i32
  }
  func.func @transform_1(%arg0: i32, %arg1: i32) -> (i32, i32) {
    %c0_i32 = arith.constant 0 : i32
    %c0_i32_0 = arith.constant 0 : i32
    %c0_i32_1 = arith.constant 0 : i32
    return %c0_i32, %c0_i32_0 : i32, i32
  }
  func.func @transform_2(%arg0: i32, %arg1: i32) -> (i32, i32) {
    %c0_i32 = arith.constant 0 : i32
    %c0_i32_0 = arith.constant 0 : i32
    %c0_i32_1 = arith.constant 0 : i32
    return %c0_i32, %c0_i32_0 : i32, i32
  }
  func.func @transform_3(%arg0: i32, %arg1: i32) -> (i32, i32) {
    %c0_i32 = arith.constant 0 : i32
    %c0_i32_0 = arith.constant 0 : i32
    %c0_i32_1 = arith.constant 0 : i32
    return %c0_i32, %c0_i32_0 : i32, i32
  }
  func.func @transform_4(%arg0: i32, %arg1: i32) -> i32 {
    %c0_i32 = arith.constant 0 : i32
    %c0_i32_0 = arith.constant 0 : i32
    return %c0_i32 : i32
  }
  func.func @transform_5(%arg0: i32, %arg1: i32) -> (i32, i32, i32) {
    %c0_i32 = arith.constant 0 : i32
    %c0_i32_0 = arith.constant 0 : i32
    return %arg0, %arg1, %c0_i32 : i32, i32, i32
  }
}

module attributes {stable_mosaic.version = 11 : i64} {
  func.func @_output_layer_kernel(%arg0: i32, %arg1: i32, %arg2: memref<1x8x16x32xf32, #tpu.memory_space<vmem>>, %arg3: memref<256x128xf32, #tpu.memory_space<vmem>>, %arg4: memref<1x128xf32, #tpu.memory_space<vmem>>, %arg5: memref<1x128xf32, #tpu.memory_space<vmem>>, %arg6: memref<1xf32, #tpu.memory_space<smem>>, %arg7: memref<1x16x1xf32, #tpu.memory_space<vmem>>) attributes {dimension_semantics = [#tpu.dimension_semantics<parallel>, #tpu.dimension_semantics<parallel>], iteration_bounds = array<i64: 2, 1>, scalar_prefetch = 0 : i64, scratch_operands = 0 : i64, tpu.core_type = #tpu.core_type<tc>, window_params = [{transform_indices = @transform_0, window_bounds = array<i64: 1, 8, 16, 32>}, {pipeline_mode = #tpu.pipeline_mode<synchronous>, transform_indices = @transform_1, window_bounds = array<i64: 256, 128>}, {pipeline_mode = #tpu.pipeline_mode<synchronous>, transform_indices = @transform_2, window_bounds = array<i64: 1, 128>}, {pipeline_mode = #tpu.pipeline_mode<synchronous>, transform_indices = @transform_3, window_bounds = array<i64: 1, 128>}, {transform_indices = @transform_4, window_bounds = array<i64: 1>}, {transform_indices = @transform_5, window_bounds = array<i64: 1, 16, 1>}]} {
    %c0 = arith.constant 0 : index
    %c0_0 = arith.constant 0 : index
    %c0_1 = arith.constant 0 : index
    %c0_2 = arith.constant 0 : index
    %0 = vector.load %arg2[%c0, %c0_0, %c0_1, %c0_2] : memref<1x8x16x32xf32, #tpu.memory_space<vmem>>, vector<1x1x16x32xf32>
    %1 = vector.shape_cast %0 : vector<1x1x16x32xf32> to vector<1x16x32xf32>
    %2 = vector.shape_cast %1 : vector<1x16x32xf32> to vector<16x32xf32>
    %c0_3 = arith.constant 0 : index
    %c0_4 = arith.constant 0 : index
    %3 = vector.load %arg3[%c0_3, %c0_4] : memref<256x128xf32, #tpu.memory_space<vmem>>, vector<32x128xf32>
    %cst = arith.constant dense<0.000000e+00> : vector<16x128xf32>
    %4 = tpu.matmul %2, %3, %cst {dimension_numbers = #tpu.dot_dimension_numbers<[1], [0], [0], [1], [0, 0, 1, 1], [], []>} : vector<16x32xf32>, vector<32x128xf32>, vector<16x128xf32> -> vector<16x128xf32>
    %c0_5 = arith.constant 0 : index
    %c1 = arith.constant 1 : index
    %c0_6 = arith.constant 0 : index
    %c0_7 = arith.constant 0 : index
    %5 = vector.load %arg2[%c0_5, %c1, %c0_6, %c0_7] : memref<1x8x16x32xf32, #tpu.memory_space<vmem>>, vector<1x1x16x32xf32>
    %6 = vector.shape_cast %5 : vector<1x1x16x32xf32> to vector<1x16x32xf32>
    %7 = vector.shape_cast %6 : vector<1x16x32xf32> to vector<16x32xf32>
    %c32 = arith.constant 32 : index
    %c0_8 = arith.constant 0 : index
    %8 = vector.load %arg3[%c32, %c0_8] : memref<256x128xf32, #tpu.memory_space<vmem>>, vector<32x128xf32>
    %cst_9 = arith.constant dense<0.000000e+00> : vector<16x128xf32>
    %9 = tpu.matmul %7, %8, %cst_9 {dimension_numbers = #tpu.dot_dimension_numbers<[1], [0], [0], [1], [0, 0, 1, 1], [], []>} : vector<16x32xf32>, vector<32x128xf32>, vector<16x128xf32> -> vector<16x128xf32>
    %10 = arith.addf %4, %9 : vector<16x128xf32>
    %c0_10 = arith.constant 0 : index
    %c2 = arith.constant 2 : index
    %c0_11 = arith.constant 0 : index
    %c0_12 = arith.constant 0 : index
    %11 = vector.load %arg2[%c0_10, %c2, %c0_11, %c0_12] : memref<1x8x16x32xf32, #tpu.memory_space<vmem>>, vector<1x1x16x32xf32>
    %12 = vector.shape_cast %11 : vector<1x1x16x32xf32> to vector<1x16x32xf32>
    %13 = vector.shape_cast %12 : vector<1x16x32xf32> to vector<16x32xf32>
    %c64 = arith.constant 64 : index
    %c0_13 = arith.constant 0 : index
    %14 = vector.load %arg3[%c64, %c0_13] : memref<256x128xf32, #tpu.memory_space<vmem>>, vector<32x128xf32>
    %cst_14 = arith.constant dense<0.000000e+00> : vector<16x128xf32>
    %15 = tpu.matmul %13, %14, %cst_14 {dimension_numbers = #tpu.dot_dimension_numbers<[1], [0], [0], [1], [0, 0, 1, 1], [], []>} : vector<16x32xf32>, vector<32x128xf32>, vector<16x128xf32> -> vector<16x128xf32>
    %16 = arith.addf %10, %15 : vector<16x128xf32>
    %c0_15 = arith.constant 0 : index
    %c3 = arith.constant 3 : index
    %c0_16 = arith.constant 0 : index
    %c0_17 = arith.constant 0 : index
    %17 = vector.load %arg2[%c0_15, %c3, %c0_16, %c0_17] : memref<1x8x16x32xf32, #tpu.memory_space<vmem>>, vector<1x1x16x32xf32>
    %18 = vector.shape_cast %17 : vector<1x1x16x32xf32> to vector<1x16x32xf32>
    %19 = vector.shape_cast %18 : vector<1x16x32xf32> to vector<16x32xf32>
    %c96 = arith.constant 96 : index
    %c0_18 = arith.constant 0 : index
    %20 = vector.load %arg3[%c96, %c0_18] : memref<256x128xf32, #tpu.memory_space<vmem>>, vector<32x128xf32>
    %cst_19 = arith.constant dense<0.000000e+00> : vector<16x128xf32>
    %21 = tpu.matmul %19, %20, %cst_19 {dimension_numbers = #tpu.dot_dimension_numbers<[1], [0], [0], [1], [0, 0, 1, 1], [], []>} : vector<16x32xf32>, vector<32x128xf32>, vector<16x128xf32> -> vector<16x128xf32>
    %22 = arith.addf %16, %21 : vector<16x128xf32>
    %c0_20 = arith.constant 0 : index
    %c4 = arith.constant 4 : index
    %c0_21 = arith.constant 0 : index
    %c0_22 = arith.constant 0 : index
    %23 = vector.load %arg2[%c0_20, %c4, %c0_21, %c0_22] : memref<1x8x16x32xf32, #tpu.memory_space<vmem>>, vector<1x1x16x32xf32>
    %24 = vector.shape_cast %23 : vector<1x1x16x32xf32> to vector<1x16x32xf32>
    %25 = vector.shape_cast %24 : vector<1x16x32xf32> to vector<16x32xf32>
    %c128 = arith.constant 128 : index
    %c0_23 = arith.constant 0 : index
    %26 = vector.load %arg3[%c128, %c0_23] : memref<256x128xf32, #tpu.memory_space<vmem>>, vector<32x128xf32>
    %cst_24 = arith.constant dense<0.000000e+00> : vector<16x128xf32>
    %27 = tpu.matmul %25, %26, %cst_24 {dimension_numbers = #tpu.dot_dimension_numbers<[1], [0], [0], [1], [0, 0, 1, 1], [], []>} : vector<16x32xf32>, vector<32x128xf32>, vector<16x128xf32> -> vector<16x128xf32>
    %28 = arith.addf %22, %27 : vector<16x128xf32>
    %c0_25 = arith.constant 0 : index
    %c5 = arith.constant 5 : index
    %c0_26 = arith.constant 0 : index
    %c0_27 = arith.constant 0 : index
    %29 = vector.load %arg2[%c0_25, %c5, %c0_26, %c0_27] : memref<1x8x16x32xf32, #tpu.memory_space<vmem>>, vector<1x1x16x32xf32>
    %30 = vector.shape_cast %29 : vector<1x1x16x32xf32> to vector<1x16x32xf32>
    %31 = vector.shape_cast %30 : vector<1x16x32xf32> to vector<16x32xf32>
    %c160 = arith.constant 160 : index
    %c0_28 = arith.constant 0 : index
    %32 = vector.load %arg3[%c160, %c0_28] : memref<256x128xf32, #tpu.memory_space<vmem>>, vector<32x128xf32>
    %cst_29 = arith.constant dense<0.000000e+00> : vector<16x128xf32>
    %33 = tpu.matmul %31, %32, %cst_29 {dimension_numbers = #tpu.dot_dimension_numbers<[1], [0], [0], [1], [0, 0, 1, 1], [], []>} : vector<16x32xf32>, vector<32x128xf32>, vector<16x128xf32> -> vector<16x128xf32>
    %34 = arith.addf %28, %33 : vector<16x128xf32>
    %c0_30 = arith.constant 0 : index
    %c6 = arith.constant 6 : index
    %c0_31 = arith.constant 0 : index
    %c0_32 = arith.constant 0 : index
    %35 = vector.load %arg2[%c0_30, %c6, %c0_31, %c0_32] : memref<1x8x16x32xf32, #tpu.memory_space<vmem>>, vector<1x1x16x32xf32>
    %36 = vector.shape_cast %35 : vector<1x1x16x32xf32> to vector<1x16x32xf32>
    %37 = vector.shape_cast %36 : vector<1x16x32xf32> to vector<16x32xf32>
    %c192 = arith.constant 192 : index
    %c0_33 = arith.constant 0 : index
    %38 = vector.load %arg3[%c192, %c0_33] : memref<256x128xf32, #tpu.memory_space<vmem>>, vector<32x128xf32>
    %cst_34 = arith.constant dense<0.000000e+00> : vector<16x128xf32>
    %39 = tpu.matmul %37, %38, %cst_34 {dimension_numbers = #tpu.dot_dimension_numbers<[1], [0], [0], [1], [0, 0, 1, 1], [], []>} : vector<16x32xf32>, vector<32x128xf32>, vector<16x128xf32> -> vector<16x128xf32>
    %40 = arith.addf %34, %39 : vector<16x128xf32>
    %c0_35 = arith.constant 0 : index
    %c7 = arith.constant 7 : index
    %c0_36 = arith.constant 0 : index
    %c0_37 = arith.constant 0 : index
    %41 = vector.load %arg2[%c0_35, %c7, %c0_36, %c0_37] : memref<1x8x16x32xf32, #tpu.memory_space<vmem>>, vector<1x1x16x32xf32>
    %42 = vector.shape_cast %41 : vector<1x1x16x32xf32> to vector<1x16x32xf32>
    %43 = vector.shape_cast %42 : vector<1x16x32xf32> to vector<16x32xf32>
    %c224 = arith.constant 224 : index
    %c0_38 = arith.constant 0 : index
    %44 = vector.load %arg3[%c224, %c0_38] : memref<256x128xf32, #tpu.memory_space<vmem>>, vector<32x128xf32>
    %cst_39 = arith.constant dense<0.000000e+00> : vector<16x128xf32>
    %45 = tpu.matmul %43, %44, %cst_39 {dimension_numbers = #tpu.dot_dimension_numbers<[1], [0], [0], [1], [0, 0, 1, 1], [], []>} : vector<16x32xf32>, vector<32x128xf32>, vector<16x128xf32> -> vector<16x128xf32>
    %46 = arith.addf %40, %45 : vector<16x128xf32>
    %c0_40 = arith.constant 0 : index
    %c0_41 = arith.constant 0 : index
    %47 = vector.load %arg4[%c0_40, %c0_41] : memref<1x128xf32, #tpu.memory_space<vmem>>, vector<1x128xf32>
    %48 = vector.broadcast %47 : vector<1x128xf32> to vector<16x128xf32>
    %49 = arith.addf %46, %48 : vector<16x128xf32>
    %cst_42 = arith.constant 0.000000e+00 : f32
    %50 = vector.broadcast %cst_42 : f32 to vector<16x128xf32>
    %51 = arith.maximumf %49, %50 : vector<16x128xf32>
    %c0_43 = arith.constant 0 : index
    %c0_44 = arith.constant 0 : index
    %52 = vector.load %arg5[%c0_43, %c0_44] : memref<1x128xf32, #tpu.memory_space<vmem>>, vector<1x128xf32>
    %53 = vector.broadcast %52 : vector<1x128xf32> to vector<16x128xf32>
    %54 = arith.mulf %51, %53 : vector<16x128xf32>
    %cst_45 = arith.constant dense<0.000000e+00> : vector<16xf32>
    %55 = vector.multi_reduction <add>, %54, %cst_45 [1] : vector<16x128xf32> to vector<16xf32>
    %56 = vector.shape_cast %55 : vector<16xf32> to vector<16x1xf32>
    %c0_46 = arith.constant 0 : index
    %57 = memref.load %arg6[%c0_46] : memref<1xf32, #tpu.memory_space<smem>>
    %58 = vector.broadcast %57 : f32 to vector<16x1xf32>
    %59 = arith.addf %56, %58 : vector<16x1xf32>
    %60 = vector.shape_cast %59 : vector<16x1xf32> to vector<1x16x1xf32>
    %c0_47 = arith.constant 0 : index
    %c0_48 = arith.constant 0 : index
    %c0_49 = arith.constant 0 : index
    %61 = vector.load %arg7[%c0_47, %c0_48, %c0_49] : memref<1x16x1xf32, #tpu.memory_space<vmem>>, vector<1x16x1xf32>
    tpu.vector_store %arg7[%c0_47, %c0_48, %c0_49], %60 {strides = array<i32>} : memref<1x16x1xf32, #tpu.memory_space<vmem>>, vector<1x16x1xf32>,
    return
  }
  func.func @transform_0(%arg0: i32, %arg1: i32) -> (i32, i32, i32, i32) {
    %c0_i32 = arith.constant 0 : i32
    %c0_i32_0 = arith.constant 0 : i32
    %c0_i32_1 = arith.constant 0 : i32
    return %arg0, %c0_i32, %arg1, %c0_i32_0 : i32, i32, i32, i32
  }
  func.func @transform_1(%arg0: i32, %arg1: i32) -> (i32, i32) {
    %c0_i32 = arith.constant 0 : i32
    %c0_i32_0 = arith.constant 0 : i32
    %c0_i32_1 = arith.constant 0 : i32
    return %c0_i32, %c0_i32_0 : i32, i32
  }
  func.func @transform_2(%arg0: i32, %arg1: i32) -> (i32, i32) {
    %c0_i32 = arith.constant 0 : i32
    %c0_i32_0 = arith.constant 0 : i32
    %c0_i32_1 = arith.constant 0 : i32
    return %c0_i32, %c0_i32_0 : i32, i32
  }
  func.func @transform_3(%arg0: i32, %arg1: i32) -> (i32, i32) {
    %c0_i32 = arith.constant 0 : i32
    %c0_i32_0 = arith.constant 0 : i32
    %c0_i32_1 = arith.constant 0 : i32
    return %c0_i32, %c0_i32_0 : i32, i32
  }
  func.func @transform_4(%arg0: i32, %arg1: i32) -> i32 {
    %c0_i32 = arith.constant 0 : i32
    %c0_i32_0 = arith.constant 0 : i32
    return %c0_i32 : i32
  }
  func.func @transform_5(%arg0: i32, %arg1: i32) -> (i32, i32, i32) {
    %c0_i32 = arith.constant 0 : i32
    %c0_i32_0 = arith.constant 0 : i32
    return %arg0, %arg1, %c0_i32 : i32, i32, i32
  }
}

</mosaic_0001>

<bundles_post_ra>
// kernel: output_layer_pallas.1
= control target key start
LH: loop header
LB: loop body
LE: loop exit
PB: predicated region body
PF: predicated region fallthrough
CT: control target
= control target key end

     0   :  { %s1186_s0 = inlined_call_operand.hbm [shape: f32[2,8,16,32], index: 0, kind: input, shape index: {}]   ;;  %s1187_s1 = inlined_call_operand.hbm [shape: f32[256,128], index: 1, kind: input, shape index: {}]   ;;  %s1188_s2 = inlined_call_operand.vmem [shape: f32[1,128], index: 2, kind: input, shape index: {}]   ;;  %s1189_s3 = inlined_call_operand.vmem [shape: f32[1,128], index: 3, kind: input, shape index: {}]   ;;  %s1190_s4 = inlined_call_operand.<no memory space> [shape: f32[1], index: 4, kind: input, shape index: {}]   ;;  %s1191_s5 = inlined_call_operand.vmem [shape: f32[2,16,1], index: 5, kind: output, shape index: {}]  }
   0x1   :  { %10 = sst [smem:[#allocation2]] %s1190_s4 }
   0x2   :  { %11 = vsyncpa [#allocation4], 0 }
   0x3   :  { %13 = vsyncpa [#allocation4 + $0x1], 0 }
   0x4   :  { %14 = vsyncpa [#allocation6], 0  ;;  %s990_s20 = smov 0   ;;  %s992_s21 = smov 0  }
   0x5   :  { %s994_s22 = smov 0   ;;  %s996_s23 = smov 0  }
   0x6   :  { %s998_s24 = smov 0   ;;  %s1000_s25 = smov 0  }
   0x7 LB: > { %s616_s4 = sadd.s32 4294967295, %s948_s25   ;;  %p54_p0 = scmp.ne.s32.totalorder %s932_s21, %s928_s20  ;;  %s948_s25 = sphi %s1000_s25, %s20_s25   ;;  %s944_s24 = sphi %s998_s24, %s1208_s24   ;;  %s940_s23 = sphi %s996_s23, %s1207_s23   ;;  %s936_s22 = sphi %s994_s22, %s1206_s22   ;;  %s932_s21 = sphi %s992_s21, %s1205_s21   ;;  %s928_s20 = sphi %s990_s20, %s1204_s20  }
   0x8   : > { %p1020_p1 = scmp.eq.s32.totalorder %s616_s4, 0  ;;  %p618_p2 = scmp.ge.s32.totalorder %s948_s25, 1 }
   0x9   : > { %p177_p3 = scmp.lt.s32.totalorder %s948_s25, 3  ;;  %s950_s29 = smov [#allocation5]  }
   0xa   : > { %s1196_s26 = scalar_select %p1020_p1, 1, 0 }
   0xb   : > { %p1028_p4 = por %p1020_p1, %p54_p0  ;;  %p1032_p5 = pnand %p618_p2, %p177_p3 }
   0xc   : > { %s189_s30 = sshll.u32 %s950_s29, 4  ;;  %s32_s7 = sadd.s32 1, %s944_s24  ;;  %s190_s30 = int_to_ptr.vmem [resolvable:$true] %s189_s30 }
   0xd   : > { %s1197_s27 = scalar_select %p1028_p4, 1, 0 }
   0xe   : > { %s1198_s28 = scalar_select %p1032_p5, 1, 0 }
   0xf   : > { %p741_p6 = pneg %p1032_p5  ;;  %s836_s10 = scalar_lea.hbm %s1187_s1, 4096 }
  0x10   : > { %p837_p8 = scmp.ne.s32.totalorder %s1187_s1, %s836_s10  ;;  %p843_p12 = scmp.lt.u32.totalorder %s836_s10, %s1187_s1 }
  0x11   : > { %p1040_p7 = pnand %p741_p6, %p1020_p1 }
  0x13   : > { %p838_p9 = pneg %p1040_p7 }
  0x15   : > { %p839_p10 = pnand %p838_p9, %p837_p8 }
  0x17   : > { %p840_p11 = pneg %p839_p10 }
  0x19   : > { %p845_p13 = pnand %p843_p12, %p840_p11 }
  0x1b   : > { %848 = shalt.err (!%p845_p13)
}
  0x1c   : > { %s849_s15 = scalar_lea.vmem %s190_s30, 4096  ;;  %p857_p6 = scmp.lt.s32.totalorder %s190_s30, %s190_s30 }
  0x1d   : > { %p850_p0 = scmp.ne.s32.totalorder %s190_s30, %s849_s15  ;;  %p858_p1 = scmp.lt.s32.totalorder %s849_s15, %s849_s15 }
  0x1f   : > { %p852_p2 = pnand %p850_p0, %p838_p9  ;;  %p859_p4 = por %p858_p1, %p857_p6 }
  0x21   : > { %p853_p3 = pneg %p852_p2 }
  0x23   : > { %p860_p5 = pnand %p859_p4, %p853_p3 }
  0x25   : > { %863 = shalt.err (!%p860_p5)
}
  0x26   : > { %s951_s16 = smov 128   ;;  %s952_s17 = smov 8  }
  0x27   : > { %744 = dma.hbm_to_vmem [thread:$0]  (!%p1040_p7), %s1187_s1, 4096, %s190_s30, [#allocation6], %s951_s16, %s951_s16, %s952_s17  }
  0x28   : > { %p34_p1 = scmp.ge.s32.totalorder %s32_s7, 2  ;;  %s41_s20 = sadd.s32 1, %s936_s22 }
  0x29   : > { %p48_p4 = scmp.ne.s32.totalorder %s936_s22, %s932_s21  ;;  %p49_p5 = scmp.eq.s32.totalorder %s948_s25, 0 }
  0x2a   : > { %s1210_s7 = smov (%p34_p1, %s32_s7), 0  ;;  %p750_p9 = scmp.lt.s32.totalorder %s948_s25, 2 }
  0x2b   : > { %p50_p8 = por %p49_p5, %p48_p4  ;;  %s36_s4 = ssub.s32 %s944_s24, %s1210_s7 }
  0x2c   : > { %s212_s29 = sand.u32 1, %s936_s22   ;;  %p39_p10 = scmp.eq.s32.totalorder %s36_s4, 0 }
  0x2d   : > { %s621_s6 = sshll.u32 %s212_s29, 7  ;;  %s647_s8 = sshll.u32 %s944_s24, 11 }
  0x2e   : > { %s1076_s9 = scalar_select %p39_p10, %s936_s22, %s41_s20  }
  0x2f   : > { %s1081_s30 = scalar_lea.hbm %s1186_s0, %s647_s8  ;;  %s216_s12 = scalar_lea.vmem [#allocation3], %s621_s6 }
  0x30   : > { %s225_s13 = sshll.u32 %s216_s12, 4  ;;  %p1083_p7 = pnand %p750_p9, %p50_p8  ;;  %s1087_s13 = int_to_ptr.vmem [resolvable:$true] %s225_s13 }
  0x31   : > { %s1089_s15 = scalar_lea.sflag [#allocation4], %s212_s29  ;;  %s864_s18 = scalar_lea.hbm %s1081_s30, 2048 }
  0x32   : > { %p865_p11 = scmp.ne.s32.totalorder %s1081_s30, %s864_s18  ;;  %p866_p12 = pneg %p1083_p7 }
  0x33   : > { %s869_s4 = scalar_lea.hbm %s1186_s0, 4096  ;;  %p870_p2 = scmp.lt.u32.totalorder %s1081_s30, %s1186_s0 }
  0x34   : > { %p867_p13 = pnand %p866_p12, %p865_p11  ;;  %p871_p3 = scmp.lt.u32.totalorder %s869_s4, %s864_s18 }
  0x35   : > { %p873_p1 = scmp.lt.u32.totalorder %s864_s18, %s1081_s30 }
  0x36   : > { %p868_p0 = pneg %p867_p13  ;;  %p872_p6 = por %p871_p3, %p870_p2 }
  0x38   : > { %p874_p4 = por %p873_p1, %p872_p6 }
  0x3a   : > { %p875_p5 = pnand %p874_p4, %p868_p0 }
  0x3c   : > { %878 = shalt.err (!%p875_p5)
}
  0x3d   : > { %s879_s29 = scalar_lea.vmem %s1087_s13, 2048  ;;  %s953_s10 = smov [#allocation3]  }
  0x3e   : > { %p880_p8 = scmp.ne.s32.totalorder %s1087_s13, %s879_s29  ;;  %s884_s11 = sshll.u32 %s953_s10, 4  ;;  %s885_s11 = int_to_ptr.vmem [resolvable:$false] %s884_s11 }
  0x3f   : > { %s886_s12 = scalar_lea.vmem %s885_s11, 4096  ;;  %p887_p11 = scmp.lt.s32.totalorder %s1087_s13, %s885_s11 }
  0x40   : > { %p882_p9 = pnand %p880_p8, %p866_p12  ;;  %p888_p13 = scmp.lt.s32.totalorder %s886_s12, %s879_s29 }
  0x42   : > { %p883_p10 = pneg %p882_p9  ;;  %p889_p2 = por %p888_p13, %p887_p11 }
  0x44   : > { %p890_p3 = pnand %p889_p2, %p883_p10 }
  0x46   : > { %893 = shalt.err (!%p890_p3)
}
  0x47   : > { %748 = dma.hbm_to_vmem [thread:$0]  (!%p1083_p7), %s1081_s30, 2048, %s1087_s13, %s1089_s15, %s951_s16, %s951_s16, %s952_s17  }
  0x48   : > { %p1201_p12 = scmp.ne.s32.totalorder %s1198_s28, 0 }
  0x49   : > { %s239_s18 = sand.u32 (!%p1201_p12), 1, %s932_s21   ;;  %p1202_p0 = scmp.ne.s32.totalorder (!%p1201_p12), %s1197_s27, 0 }
  0x4a   : > { %237 = sbr.rel (%p1201_p12) target bundleno = 582 (0x246), region = 40  ;;  %s625_s19 = sshll.u32 (!%p1201_p12), %s239_s18, 7 }
  0x4b   : > { %s240_s20 = scalar_lea.sflag (!%p1201_p12), [#allocation4], %s239_s18  ;;  %s1123_s4 = scalar_lea.vmem (!%p1201_p12), [#allocation3], %s625_s19 }
  0x51   : > { %919 = dma.done.wait (%p1202_p0), %s240_s20, 2048  }
  0x52   : > { %921 = vsyncadd (%p1202_p0), %s240_s20, 4294965248  ;;  %p1203_p6 = scmp.ne.s32.totalorder %s1196_s26, 0 }
  0x54   : > { %923 = dma.done.wait (%p1203_p6), [#allocation6], 4096  }
  0x55   : > { %925 = vsyncadd (%p1203_p6), [#allocation6], 4294963200  ;;  %v639_v0 = vld [vmem:[%s1123_s4 + $0x60] sm:$0xff]  ;;  %v640_v1 = vld [vmem:[%s1123_s4 + $0x68] sm:$0xff]  ;;  %s954_s26 = smov 64   ;;  %s955_s27 = smov 32  }
  0x56   : > { %v637_v2 = vld [vmem:[%s1123_s4 + $0x50] sm:$0xff]  ;;  %v816_v3 = vpack.i.bf16 %v640_v1, %v639_v0  ;;  %v638_v4 = vld [vmem:[%s1123_s4 + $0x58] sm:$0xff]  ;;  %v631_v5 = vld [vmem:[%s1123_s4 + $0x20] sm:$0xff]  ;;  %s956_s28 = smov 96   ;;  %vm360_vm0 = vcmask 261120   ;;  %vm363_vm1 = vcmask 523264  }
  0x57   : > { %v632_v6 = vld [vmem:[%s1123_s4 + $0x28] sm:$0xff]  ;;  %v806_v7 = vpack.i.bf16 %v638_v4, %v637_v2  ;;  %v629_v8 = vld [vmem:[%s1123_s4 + $0x10] sm:$0xff]  ;;  %v630_v9 = vld [vmem:[%s1123_s4 + $0x18] sm:$0xff]  ;;  %vm366_vm2 = vcmask 785408   ;;  %p280_p7 = scmp.lt.s32.totalorder %s940_s23, 1  ;;  %s504_s14 = sld [smem:[#allocation2]] }
  0x58   : > { %v633_v10 = vld [vmem:[%s1123_s4 + $0x30] sm:$0xff]  ;;  %817 = vrot.lane.b32.xlu1 %v816_v3, %s954_s26  ;;  %v821_v11 = vpack.i.bf16 %v632_v6, %v631_v5  ;;  %v634_v12 = vld [vmem:[%s1123_s4 + $0x38] sm:$0xff]  ;;  %v811_v15 = vpack.i.bf16 %v630_v9, %v629_v8  ;;  %v391_v16 = vld [vmem:[#allocation5 + $0x80] sm:$0xff]  ;;  %vm508_vm3 = vcmask 7168  }
  0x59   : > { %v641_v13 = vld [vmem:[%s1123_s4 + $0x70] sm:$0xff]  ;;  %v642_v14 = vld [vmem:[%s1123_s4 + $0x78] sm:$0xff]  ;;  %807 = vrot.lane.b32.xlu0 %v806_v7, %s955_s27  ;;  %v392_v17 = vld [vmem:[#allocation5 + $0x88] sm:$0xff]  ;;  %v831_v27 = vpack.i.bf16 %v634_v12, %v633_v10  ;;  %s1212_s23 = smov (!%p280_p7, %s940_s23), 1 }
  0x5a   : > { %v375_v18 = vld [vmem:[#allocation5] sm:$0xff]  ;;  %v687_v19 = vpack.c.bf16 %v392_v17, %v391_v16  ;;  %v376_v20 = vld [vmem:[#allocation5 + $0x8] sm:$0xff]  ;;  %v393_v21 = vld [vmem:[#allocation5 + $0x90] sm:$0xff]  ;;  %v826_v30 = vpack.i.bf16 %v642_v14, %v641_v13  ;;  %s648_s15 = sshll.u32 %s1212_s23, 4 }
  0x5b   : > { %v394_v22 = vld [vmem:[#allocation5 + $0x98] sm:$0xff]  ;;  %v689_v23 = vpack.c.bf16 %v376_v20, %v375_v18  ;;  %v377_v25 = vld [vmem:[#allocation5 + $0x10] sm:$0xff]  ;;  %v395_v28 = vld [vmem:[#allocation5 + $0xa0] sm:$0xff]  ;;  %s287_s29 = scalar_lea.vmem %s1191_s5, %s648_s15 }
  0x5c   : > { %v691_v24 = vpack.c.bf16 %v394_v22, %v393_v21  ;;  %v378_v26 = vld [vmem:[#allocation5 + $0x18] sm:$0xff]  ;;  %822 = vrot.lane.b32.xlu1 %v821_v11, %s954_s26  ;;  %688 = vmatprep.subr.bf16.mxu0 %v687_v19  ;;  %v396_v29 = vld [vmem:[#allocation5 + $0xa8] sm:$0xff]  ;;  %v379_v33 = vld [vmem:[#allocation5 + $0x20] sm:$0xff] }
  0x5d   : > { %812 = vrot.lane.b32.xlu0 %v811_v15, %s955_s27  ;;  %719 = vmatprep.subr.bf16.mxu1 %v687_v19  ;;  %v693_v31 = vpack.c.bf16 %v378_v26, %v377_v25  ;;  %v695_v32 = vpack.c.bf16 %v396_v29, %v395_v28  ;;  %v380_v34 = vld [vmem:[#allocation5 + $0x28] sm:$0xff]  ;;  %v397_v35 = vld [vmem:[#allocation5 + $0xb0] sm:$0xff]  ;;  %v398_v36 = vld [vmem:[#allocation5 + $0xb8] sm:$0xff] }
  0x5e   : > { %690 = vmatpush3.bf16.msra.mxu0 %v689_v23  ;;  %727 = vmatpush3.bf16.msra.mxu1 %v689_v23  ;;  %v697_v37 = vpack.c.bf16 %v380_v34, %v379_v33  ;;  %v699_v38 = vpack.c.bf16 %v398_v36, %v397_v35  ;;  %v381_v39 = vld [vmem:[#allocation5 + $0x30] sm:$0xff]  ;;  %v382_v40 = vld [vmem:[#allocation5 + $0x38] sm:$0xff]  ;;  %v399_v41 = vld [vmem:[#allocation5 + $0xc0] sm:$0xff] }
  0x5f   : > { %692 = vmatprep.subr.bf16.mxu0 %v691_v24  ;;  %720 = vmatprep.subr.bf16.mxu1 %v691_v24  ;;  %v400_v42 = vld [vmem:[#allocation5 + $0xc8] sm:$0xff]  ;;  %v701_v43 = vpack.c.bf16 %v382_v40, %v381_v39  ;;  %v383_v45 = vld [vmem:[#allocation5 + $0x40] sm:$0xff]  ;;  %v401_v47 = vld [vmem:[#allocation5 + $0xd0] sm:$0xff] }
  0x60   : > { %832 = vrot.lane.b32.xlu1 %v831_v27, %s956_s28  ;;  %v703_v44 = vpack.c.bf16 %v400_v42, %v399_v41  ;;  %v384_v46 = vld [vmem:[#allocation5 + $0x48] sm:$0xff]  ;;  %v402_v48 = vld [vmem:[#allocation5 + $0xd8] sm:$0xff]  ;;  %v385_v51 = vld [vmem:[#allocation5 + $0x50] sm:$0xff] }
  0x61   : > { %827 = vrot.lane.b32.xlu0 %v826_v30, %s956_s28  ;;  %v705_v49 = vpack.c.bf16 %v384_v46, %v383_v45  ;;  %v707_v50 = vpack.c.bf16 %v402_v48, %v401_v47  ;;  %v386_v52 = vld [vmem:[#allocation5 + $0x58] sm:$0xff]  ;;  %v403_v53 = vld [vmem:[#allocation5 + $0xe0] sm:$0xff]  ;;  %v404_v54 = vld [vmem:[#allocation5 + $0xe8] sm:$0xff] }
  0x62   : > { %694 = vmatpush3.bf16.msra.mxu0 %v693_v31  ;;  %728 = vmatpush3.bf16.msra.mxu1 %v693_v31  ;;  %v709_v55 = vpack.c.bf16 %v386_v52, %v385_v51  ;;  %v711_v56 = vpack.c.bf16 %v404_v54, %v403_v53  ;;  %v387_v57 = vld [vmem:[#allocation5 + $0x60] sm:$0xff]  ;;  %v388_v58 = vld [vmem:[#allocation5 + $0x68] sm:$0xff]  ;;  %v405_v59 = vld [vmem:[#allocation5 + $0xf0] sm:$0xff] }
  0x63   : > { %696 = vmatprep.subr.bf16.mxu0 %v695_v32  ;;  %721 = vmatprep.subr.bf16.mxu1 %v695_v32  ;;  %v406_v60 = vld [vmem:[#allocation5 + $0xf8] sm:$0xff]  ;;  %v713_v61 = vpack.c.bf16 %v388_v58, %v387_v57  ;;  %v389_v63 = vld [vmem:[#allocation5 + $0x70] sm:$0xff]  ;;  %v635_v7 = vld [vmem:[%s1123_s4 + $0x40] sm:$0xff] }
  0x64   : > { %v715_v62 = vpack.c.bf16 %v406_v60, %v405_v59  ;;  %v390_v0 = vld [vmem:[#allocation5 + $0x78] sm:$0xff]  ;;  %v636_v9 = vld [vmem:[%s1123_s4 + $0x48] sm:$0xff]  ;;  %v289_v10 = vld [vmem:[%s1123_s4] sm:$0xff] }
  0x65   : > { %v717_v1 = vpack.c.bf16 %v390_v0, %v389_v63  ;;  %v290_v11 = vld [vmem:[%s1123_s4 + $0x8] sm:$0xff]  ;;  %v644_v45 = vld [vmem:[%s1189_s3] ss:$0 sm:$0xff] }
  0x66   : > { %698 = vmatpush3.bf16.msra.mxu0 %v697_v37  ;;  %729 = vmatpush3.bf16.msra.mxu1 %v697_v37 }
  0x67   : > { %700 = vmatprep.subr.bf16.mxu0 %v699_v38  ;;  %722 = vmatprep.subr.bf16.mxu1 %v699_v38  ;;  %v643_v38 = vld [vmem:[%s1188_s2] ss:$0 sm:$0xff] }
  0x6a   : > { %702 = vmatpush3.bf16.msra.mxu0 %v701_v43  ;;  %730 = vmatpush3.bf16.msra.mxu1 %v701_v43 }
  0x6b   : > { %704 = vmatprep.subr.bf16.mxu0 %v703_v44  ;;  %723 = vmatprep.subr.bf16.mxu1 %v703_v44 }
  0x6e   : > { %706 = vmatpush3.bf16.msra.mxu0 %v705_v49  ;;  %731 = vmatpush3.bf16.msra.mxu1 %v705_v49 }
  0x6f   : > { %708 = vmatprep.subr.bf16.mxu0 %v707_v50  ;;  %724 = vmatprep.subr.bf16.mxu1 %v707_v50  ;;  %v505_v50 = vstv %s504_s14 }
  0x72   : > { %710 = vmatpush3.bf16.msra.mxu0 %v709_v55  ;;  %732 = vmatpush3.bf16.msra.mxu1 %v709_v55 }
  0x73   : > { %712 = vmatprep.subr.bf16.mxu0 %v711_v56  ;;  %725 = vmatprep.subr.bf16.mxu1 %v711_v56 }
  0x76   : > { %714 = vmatpush3.bf16.msra.mxu0 %v713_v61  ;;  %733 = vmatpush3.bf16.msra.mxu1 %v713_v61 }
  0x77   : > { %716 = vmatprep.subr.bf16.mxu0 %v715_v62  ;;  %726 = vmatprep.subr.bf16.mxu1 %v715_v62 }
  0x7a   : > { %718 = vmatpush3.bf16.msra.mxu0 %v717_v1  ;;  %734 = vmatpush3.bf16.msra.mxu1 %v717_v1 }
  0xca   : > { %v818_v2 = vpop.permute.xlu1 %817 }
  0xcb   : > { %v808_v3 = vpop.permute.xlu0 %807  ;;  %v820_v16 = vunpack.i.h.bf16 %v818_v2  ;;  %v819_v17 = vunpack.i.l.bf16 %v818_v2 }
  0xcc   : > { %v810_v4 = vunpack.i.h.bf16 %v808_v3  ;;  %v809_v5 = vunpack.i.l.bf16 %v808_v3 }
  0xce   : > { %v823_v6 = vpop.permute.xlu1 %822  ;;  %v369_v19 = vsel %vm360_vm0, %v635_v7, %v809_v5  ;;  %v370_v20 = vsel %vm360_vm0, %v636_v9, %v810_v4 }
  0xcf   : > { %v813_v8 = vpop.permute.xlu0 %812  ;;  %v825_v12 = vunpack.i.h.bf16 %v823_v6  ;;  %v824_v13 = vunpack.i.l.bf16 %v823_v6  ;;  %v371_v30 = vsel %vm363_vm1, %v369_v19, %v819_v17  ;;  %v372_v31 = vsel %vm363_vm1, %v370_v20, %v820_v16 }
  0xd0   : > { %v815_v14 = vunpack.i.h.bf16 %v813_v8  ;;  %v814_v15 = vunpack.i.l.bf16 %v813_v8 }
  0xd2   : > { %v833_v18 = vpop.permute.xlu1 %832  ;;  %v361_v21 = vsel %vm360_vm0, %v289_v10, %v814_v15  ;;  %v362_v22 = vsel %vm360_vm0, %v290_v11, %v815_v14 }
  0xd3   : > { %v835_v23 = vunpack.i.h.bf16 %v833_v18  ;;  %v834_v24 = vunpack.i.l.bf16 %v833_v18  ;;  %v828_v25 = vpop.permute.xlu0 %827  ;;  %v364_v28 = vsel %vm363_vm1, %v361_v21, %v824_v13  ;;  %v365_v29 = vsel %vm363_vm1, %v362_v22, %v825_v12 }
  0xd4   : > { %v830_v26 = vunpack.i.h.bf16 %v828_v25  ;;  %v829_v27 = vunpack.i.l.bf16 %v828_v25 }
  0xd5   : > { %v367_v32 = vsel %vm366_vm2, %v364_v28, %v834_v24  ;;  %v368_v33 = vsel %vm366_vm2, %v365_v29, %v835_v23 }
  0xd6   : > { %v373_v34 = vsel %vm366_vm2, %v371_v30, %v829_v27  ;;  %v374_v35 = vsel %vm366_vm2, %v372_v31, %v830_v26 }
  0xd7   : > { %478 = vmatprep.mubr.f32.mxu0 %v373_v34  ;;  %483 = vmatprep.mubr.f32.mxu1 %v374_v35 }
  0xd8   : > { %479 = vmatmul.mubr.f32.vlgmr.msra.gmra.mrb[0].mxu0 %v367_v32  ;;  %484 = vmatmul.mubr.f32.vlgmr.msra.gmra.mrb[0].mxu1 %v368_v33 }
 0x1ab   : > { %v681_v36 = vpop.f32.mrb[0].mxu0  ;;  %v684_v37 = vpop.f32.mrb[0].mxu1 }
 0x1ac   : > { %v682_v39 = vpop.f32.mrb[1].mxu0  ;;  %v685_v40 = vpop.f32.mrb[1].mxu1 }
 0x1ad   : > { %v683_v41 = vadd.f32 %v682_v39, %v681_v36  ;;  %v686_v42 = vadd.f32 %v685_v40, %v684_v37 }
 0x1af   : > { %v481_v43 = vadd.f32 %v683_v41, %v643_v38  ;;  %v486_v44 = vadd.f32 %v686_v42, %v643_v38 }
 0x1b1   : > { %v489_v46 = vmax.f32 %v481_v43, 0.0  ;;  %v490_v47 = vmax.f32 %v486_v44, 0.0 }
 0x1b3   : > { %v499_v48 = vmul.f32 %v644_v45, %v490_v47  ;;  %v498_v49 = vmul.f32 %v644_v45, %v489_v46 }
 0x1b5   : > { %502 = vadd.xlane.f32.xlu1 %v499_v48  ;;  %500 = vadd.xlane.f32.xlu0 %v498_v49 }
 0x242   : > { %v503_v51 = vpop.xlane.xlu1 %502  ;;  %v501_v52 = vpop.xlane.xlu0 %500 }
 0x243   : > { %v507_v53 = vadd.f32 %v505_v50, %v503_v51  ;;  %v506_v54 = vadd.f32 %v505_v50, %v501_v52 }
 0x245   : > { %510 = vst.msk [vmem:[%s287_s29 + $0x8] sm:$0xff] %vm508_vm3, %v507_v53  ;;  %509 = vst.msk [vmem:[%s287_s29] sm:$0xff] %vm508_vm3, %v506_v54 }
 0x246 PF: > { %s20_s25 = sadd.s32 1, %s948_s25   ;;  %s1204_s20 = smov %s932_s21 }
 0x247   : > { %p17_p1 = scmp.ge.s32.totalorder %s20_s25, 4   ;;  %s1205_s21 = smov %s936_s22 }
 0x248   : > { %s1206_s22 = smov %s1076_s9  ;;  %s1207_s23 = smov %s944_s24 }
 0x249   : > { %s1208_s24 = smov %s1210_s7  ;;  %19 = sbr.rel (!%p17_p1) target bundleno = 7 (0x7), region = 91 }
 0x250   :  { %541 = vsyncpa [#allocation4], 1 }
 0x251   :  { %543 = vsyncpa [#allocation4 + $0x1], 1 }
 0x252   :  { %544 = vsyncpa [#allocation6], 1 }

// kernel: output_layer_pallas.1
= control target key start
LH: loop header
LB: loop body
LE: loop exit
PB: predicated region body
PF: predicated region fallthrough
CT: control target
= control target key end

     0   :  { %s1827_s0 = inlined_call_operand.hbm [shape: f32[2,8,16,32], index: 0, kind: input, shape index: {}]   ;;  %s1828_s1 = inlined_call_operand.hbm [shape: f32[256,128], index: 1, kind: input, shape index: {}]   ;;  %s1829_s2 = inlined_call_operand.vmem [shape: f32[1,128], index: 2, kind: input, shape index: {}]   ;;  %s1830_s3 = inlined_call_operand.vmem [shape: f32[1,128], index: 3, kind: input, shape index: {}]   ;;  %s1831_s4 = inlined_call_operand.<no memory space> [shape: f32[1], index: 4, kind: input, shape index: {}]   ;;  %s1832_s5 = inlined_call_operand.vmem [shape: f32[2,16,1], index: 5, kind: output, shape index: {}]  }
   0x1   :  { %10 = sst [smem:[#allocation2]] %s1831_s4 }
   0x2   :  { %11 = vsyncpa [#allocation4], 0 }
   0x3   :  { %13 = vsyncpa [#allocation4 + $0x1], 0 }
   0x4   :  { %14 = vsyncpa [#allocation6], 0  ;;  %s1623_s20 = smov 0   ;;  %s1625_s21 = smov 0  }
   0x5   :  { %s1627_s22 = smov 0   ;;  %s1629_s23 = smov 0  }
   0x6   :  { %s1631_s24 = smov 0   ;;  %s1633_s25 = smov 0  }
   0x7 LB: > { %s1141_s4 = sadd.s32 4294967295, %s1584_s25   ;;  %p54_p0 = scmp.ne.s32.totalorder %s1568_s21, %s1564_s20  ;;  %s1584_s25 = sphi %s1633_s25, %s20_s25   ;;  %s1580_s24 = sphi %s1631_s24, %s1849_s24   ;;  %s1576_s23 = sphi %s1629_s23, %s1848_s23   ;;  %s1572_s22 = sphi %s1627_s22, %s1847_s22   ;;  %s1568_s21 = sphi %s1625_s21, %s1846_s21   ;;  %s1564_s20 = sphi %s1623_s20, %s1845_s20  }
   0x8   : > { %p1653_p1 = scmp.eq.s32.totalorder %s1141_s4, 0  ;;  %p1143_p2 = scmp.ge.s32.totalorder %s1584_s25, 1 }
   0x9   : > { %p177_p3 = scmp.lt.s32.totalorder %s1584_s25, 3  ;;  %s1586_s29 = smov [#allocation5]  }
   0xa   : > { %s1837_s26 = scalar_select %p1653_p1, 1, 0 }
   0xb   : > { %p1661_p4 = por %p1653_p1, %p54_p0  ;;  %p1665_p5 = pnand %p1143_p2, %p177_p3 }
   0xc   : > { %s189_s30 = sshll.u32 %s1586_s29, 4  ;;  %s32_s7 = sadd.s32 1, %s1580_s24  ;;  %s190_s30 = int_to_ptr.vmem [resolvable:$true] %s189_s30 }
   0xd   : > { %s1838_s27 = scalar_select %p1661_p4, 1, 0 }
   0xe   : > { %s1839_s28 = scalar_select %p1665_p5, 1, 0 }
   0xf   : > { %p1410_p6 = pneg %p1665_p5  ;;  %s1472_s10 = scalar_lea.hbm %s1828_s1, 4096 }
  0x10   : > { %p1473_p8 = scmp.ne.s32.totalorder %s1828_s1, %s1472_s10  ;;  %p1479_p12 = scmp.lt.u32.totalorder %s1472_s10, %s1828_s1 }
  0x11   : > { %p1673_p7 = pnand %p1410_p6, %p1653_p1 }
  0x13   : > { %p1474_p9 = pneg %p1673_p7 }
  0x15   : > { %p1475_p10 = pnand %p1474_p9, %p1473_p8 }
  0x17   : > { %p1476_p11 = pneg %p1475_p10 }
  0x19   : > { %p1481_p13 = pnand %p1479_p12, %p1476_p11 }
  0x1b   : > { %1484 = shalt.err (!%p1481_p13)
}
  0x1c   : > { %s1485_s15 = scalar_lea.vmem %s190_s30, 4096  ;;  %p1493_p6 = scmp.lt.s32.totalorder %s190_s30, %s190_s30 }
  0x1d   : > { %p1486_p0 = scmp.ne.s32.totalorder %s190_s30, %s1485_s15  ;;  %p1494_p1 = scmp.lt.s32.totalorder %s1485_s15, %s1485_s15 }
  0x1f   : > { %p1488_p2 = pnand %p1486_p0, %p1474_p9  ;;  %p1495_p4 = por %p1494_p1, %p1493_p6 }
  0x21   : > { %p1489_p3 = pneg %p1488_p2 }
  0x23   : > { %p1496_p5 = pnand %p1495_p4, %p1489_p3 }
  0x25   : > { %1499 = shalt.err (!%p1496_p5)
}
  0x26   : > { %s1587_s16 = smov 128   ;;  %s1588_s17 = smov 8  }
  0x27   : > { %1413 = dma.hbm_to_vmem [thread:$0]  (!%p1673_p7), %s1828_s1, 4096, %s190_s30, [#allocation6], %s1587_s16, %s1587_s16, %s1588_s17  }
  0x28   : > { %p34_p1 = scmp.ge.s32.totalorder %s32_s7, 2  ;;  %s41_s20 = sadd.s32 1, %s1572_s22 }
  0x29   : > { %p48_p4 = scmp.ne.s32.totalorder %s1572_s22, %s1568_s21  ;;  %p49_p5 = scmp.eq.s32.totalorder %s1584_s25, 0 }
  0x2a   : > { %s1851_s7 = smov (%p34_p1, %s32_s7), 0  ;;  %p1419_p9 = scmp.lt.s32.totalorder %s1584_s25, 2 }
  0x2b   : > { %p50_p8 = por %p49_p5, %p48_p4  ;;  %s36_s4 = ssub.s32 %s1580_s24, %s1851_s7 }
  0x2c   : > { %s212_s29 = sand.u32 1, %s1572_s22   ;;  %p39_p10 = scmp.eq.s32.totalorder %s36_s4, 0 }
  0x2d   : > { %s1146_s6 = sshll.u32 %s212_s29, 7  ;;  %s1188_s8 = sshll.u32 %s1580_s24, 11 }
  0x2e   : > { %s1709_s9 = scalar_select %p39_p10, %s1572_s22, %s41_s20  }
  0x2f   : > { %s1714_s30 = scalar_lea.hbm %s1827_s0, %s1188_s8  ;;  %s216_s12 = scalar_lea.vmem [#allocation3], %s1146_s6 }
  0x30   : > { %s225_s13 = sshll.u32 %s216_s12, 4  ;;  %p1716_p7 = pnand %p1419_p9, %p50_p8  ;;  %s1720_s13 = int_to_ptr.vmem [resolvable:$true] %s225_s13 }
  0x31   : > { %s1722_s15 = scalar_lea.sflag [#allocation4], %s212_s29  ;;  %s1500_s18 = scalar_lea.hbm %s1714_s30, 2048 }
  0x32   : > { %p1501_p11 = scmp.ne.s32.totalorder %s1714_s30, %s1500_s18  ;;  %p1502_p12 = pneg %p1716_p7 }
  0x33   : > { %s1505_s4 = scalar_lea.hbm %s1827_s0, 4096  ;;  %p1506_p2 = scmp.lt.u32.totalorder %s1714_s30, %s1827_s0 }
  0x34   : > { %p1503_p13 = pnand %p1502_p12, %p1501_p11  ;;  %p1507_p3 = scmp.lt.u32.totalorder %s1505_s4, %s1500_s18 }
  0x35   : > { %p1509_p1 = scmp.lt.u32.totalorder %s1500_s18, %s1714_s30 }
  0x36   : > { %p1504_p0 = pneg %p1503_p13  ;;  %p1508_p6 = por %p1507_p3, %p1506_p2 }
  0x38   : > { %p1510_p4 = por %p1509_p1, %p1508_p6 }
  0x3a   : > { %p1511_p5 = pnand %p1510_p4, %p1504_p0 }
  0x3c   : > { %1514 = shalt.err (!%p1511_p5)
}
  0x3d   : > { %s1515_s29 = scalar_lea.vmem %s1720_s13, 2048  ;;  %s1589_s10 = smov [#allocation3]  }
  0x3e   : > { %p1516_p8 = scmp.ne.s32.totalorder %s1720_s13, %s1515_s29  ;;  %s1520_s11 = sshll.u32 %s1589_s10, 4  ;;  %s1521_s11 = int_to_ptr.vmem [resolvable:$false] %s1520_s11 }
  0x3f   : > { %s1522_s12 = scalar_lea.vmem %s1521_s11, 4096  ;;  %p1523_p11 = scmp.lt.s32.totalorder %s1720_s13, %s1521_s11 }
  0x40   : > { %p1518_p9 = pnand %p1516_p8, %p1502_p12  ;;  %p1524_p13 = scmp.lt.s32.totalorder %s1522_s12, %s1515_s29 }
  0x42   : > { %p1519_p10 = pneg %p1518_p9  ;;  %p1525_p2 = por %p1524_p13, %p1523_p11 }
  0x44   : > { %p1526_p3 = pnand %p1525_p2, %p1519_p10 }
  0x46   : > { %1529 = shalt.err (!%p1526_p3)
}
  0x47   : > { %1417 = dma.hbm_to_vmem [thread:$0]  (!%p1716_p7), %s1714_s30, 2048, %s1720_s13, %s1722_s15, %s1587_s16, %s1587_s16, %s1588_s17  }
  0x48   : > { %p1842_p12 = scmp.ne.s32.totalorder %s1839_s28, 0 }
  0x49   : > { %s239_s18 = sand.u32 (!%p1842_p12), 1, %s1568_s21   ;;  %p1843_p0 = scmp.ne.s32.totalorder (!%p1842_p12), %s1838_s27, 0 }
  0x4a   : > { %237 = sbr.rel (%p1842_p12) target bundleno = 491 (0x1eb), region = 40  ;;  %s1150_s19 = sshll.u32 (!%p1842_p12), %s239_s18, 7 }
  0x4b   : > { %s240_s20 = scalar_lea.sflag (!%p1842_p12), [#allocation4], %s239_s18  ;;  %s1756_s4 = scalar_lea.vmem (!%p1842_p12), [#allocation3], %s1150_s19 }
  0x51   : > { %1555 = dma.done.wait (%p1843_p0), %s240_s20, 2048  }
  0x52   : > { %1557 = vsyncadd (%p1843_p0), %s240_s20, 4294965248  ;;  %p1844_p6 = scmp.ne.s32.totalorder %s1837_s26, 0 }
  0x54   : > { %1559 = dma.done.wait (%p1844_p6), [#allocation6], 4096  }
  0x55   : > { %1561 = vsyncadd (%p1844_p6), [#allocation6], 4294963200  ;;  %v298_v0 = vld [vmem:[#allocation5 + $0x20] sm:$0xff]  ;;  %v299_v1 = vld [vmem:[#allocation5 + $0x28] sm:$0xff]  ;;  %vm302_vm0 = vcmask 261120   ;;  %p280_p7 = scmp.lt.s32.totalorder %s1576_s23, 1 }
  0x56   : > { %v648_v2 = vld [vmem:[#allocation5 + $0x80] sm:$0xff]  ;;  %v1326_v3 = vpack.c.bf16 %v299_v1, %v298_v0  ;;  %v649_v4 = vld [vmem:[#allocation5 + $0x88] sm:$0xff]  ;;  %v300_v5 = vld [vmem:[#allocation5 + $0x30] sm:$0xff]  ;;  %s1029_s17 = sld [smem:[#allocation2]]  ;;  %vm1033_vm1 = vcmask 7168  }
  0x57   : > { %v301_v6 = vld [vmem:[#allocation5 + $0x38] sm:$0xff]  ;;  %v1358_v7 = vpack.c.bf16 %v649_v4, %v648_v2  ;;  %v650_v9 = vld [vmem:[#allocation5 + $0x90] sm:$0xff]  ;;  %v1168_v13 = vld [vmem:[%s1756_s4 + $0x40] sm:$0xff]  ;;  %s1853_s23 = smov (!%p280_p7, %s1576_s23), 1 }
  0x58   : > { %v1330_v8 = vpack.c.bf16 %v301_v6, %v300_v5  ;;  %v651_v10 = vld [vmem:[#allocation5 + $0x98] sm:$0xff]  ;;  %v1154_v11 = vld [vmem:[%s1756_s4 + $0x10] sm:$0xff]  ;;  %1327 = vmatprep.subr.bf16.mxu1 %v1326_v3  ;;  %v291_v14 = vld [vmem:[#allocation5] sm:$0xff]  ;;  %1290 = vmatprep.mubr.msk.f32.mxu0 %vm302_vm0, %v1168_v13  ;;  %s1189_s30 = sshll.u32 %s1853_s23, 4 }
  0x59   : > { %v1362_v12 = vpack.c.bf16 %v651_v10, %v650_v9  ;;  %1246 = vmatprep.mubr.msk.f32.mxu1 %vm302_vm0, %v1154_v11  ;;  %1359 = vmatprep.subr.bf16.mxu0 %v1358_v7  ;;  %v292_v15 = vld [vmem:[#allocation5 + $0x8] sm:$0xff]  ;;  %v738_v16 = vld [vmem:[#allocation5 + $0xa0] sm:$0xff]  ;;  %v293_v20 = vld [vmem:[#allocation5 + $0x10] sm:$0xff]  ;;  %s287_s15 = scalar_lea.vmem %s1832_s5, %s1189_s30 }
  0x5a   : > { %1329 = vmatpush3.bf16.msra.mxu1 %v1326_v3  ;;  %1361 = vmatpush3.bf16.msra.mxu0 %v1358_v7  ;;  %v1334_v17 = vpack.c.bf16 %v292_v15, %v291_v14  ;;  %v739_v18 = vld [vmem:[#allocation5 + $0xa8] sm:$0xff]  ;;  %v294_v21 = vld [vmem:[#allocation5 + $0x18] sm:$0xff]  ;;  %v740_v22 = vld [vmem:[#allocation5 + $0xb0] sm:$0xff] }
  0x5b   : > { %1331 = vmatprep.subr.bf16.mxu1 %v1330_v8  ;;  %1363 = vmatprep.subr.bf16.mxu0 %v1362_v12  ;;  %v1366_v19 = vpack.c.bf16 %v739_v18, %v738_v16  ;;  %v741_v23 = vld [vmem:[#allocation5 + $0xb8] sm:$0xff]  ;;  %v1169_v25 = vld [vmem:[%s1756_s4 + $0x48] sm:$0xff]  ;;  %v1338_v26 = vpack.c.bf16 %v294_v21, %v293_v20  ;;  %v468_v28 = vld [vmem:[#allocation5 + $0x40] sm:$0xff] }
  0x5c   : > { %v1155_v24 = vld [vmem:[%s1756_s4 + $0x18] sm:$0xff]  ;;  %v1370_v27 = vpack.c.bf16 %v741_v23, %v740_v22  ;;  %v469_v29 = vld [vmem:[#allocation5 + $0x48] sm:$0xff]  ;;  %v289_v30 = vld [vmem:[%s1756_s4] sm:$0xff]  ;;  %v1030_v14 = vstv %s1029_s17 }
  0x5d   : > { %v828_v31 = vld [vmem:[#allocation5 + $0xc0] sm:$0xff]  ;;  %v829_v32 = vld [vmem:[#allocation5 + $0xc8] sm:$0xff]  ;;  %v1172_v33 = vld [vmem:[%s1756_s4 + $0x50] sm:$0xff]  ;;  %v1342_v34 = vpack.c.bf16 %v469_v29, %v468_v28 }
  0x5e   : > { %1333 = vmatpush3.bf16.msra.mxu1 %v1330_v8  ;;  %1365 = vmatpush3.bf16.msra.mxu0 %v1362_v12  ;;  %v1374_v35 = vpack.c.bf16 %v829_v32, %v828_v31  ;;  %v470_v36 = vld [vmem:[#allocation5 + $0x50] sm:$0xff]  ;;  %v471_v37 = vld [vmem:[#allocation5 + $0x58] sm:$0xff]  ;;  %v290_v40 = vld [vmem:[%s1756_s4 + $0x8] sm:$0xff] }
  0x5f   : > { %1335 = vmatprep.subr.bf16.mxu1 %v1334_v17  ;;  %1367 = vmatprep.subr.bf16.mxu0 %v1366_v19  ;;  %v830_v38 = vld [vmem:[#allocation5 + $0xd0] sm:$0xff]  ;;  %v831_v39 = vld [vmem:[#allocation5 + $0xd8] sm:$0xff]  ;;  %v1346_v42 = vpack.c.bf16 %v471_v37, %v470_v36  ;;  %v558_v44 = vld [vmem:[#allocation5 + $0x60] sm:$0xff] }
  0x60   : > { %v1173_v41 = vld [vmem:[%s1756_s4 + $0x58] sm:$0xff]  ;;  %v1378_v43 = vpack.c.bf16 %v831_v39, %v830_v38  ;;  %v559_v45 = vld [vmem:[#allocation5 + $0x68] sm:$0xff]  ;;  %v1160_v46 = vld [vmem:[%s1756_s4 + $0x20] sm:$0xff] }
  0x61   : > { %1247 = vmatmul.mubr.msk.f32.vlgmr.msra.gmra.mrb[0].mxu1 %vm302_vm0, %v1155_v24  ;;  %1291 = vmatmul.mubr.msk.f32.vlgmr.msra.gmra.mrb[0].mxu0 %vm302_vm0, %v1169_v25  ;;  %v918_v47 = vld [vmem:[#allocation5 + $0xe0] sm:$0xff]  ;;  %v919_v48 = vld [vmem:[#allocation5 + $0xe8] sm:$0xff]  ;;  %v1350_v50 = vpack.c.bf16 %v559_v45, %v558_v44  ;;  %v560_v52 = vld [vmem:[#allocation5 + $0x70] sm:$0xff] }
  0x62   : > { %1337 = vmatpush3.bf16.msra.mxu1 %v1334_v17  ;;  %1369 = vmatpush3.bf16.msra.mxu0 %v1366_v19  ;;  %v1176_v49 = vld [vmem:[%s1756_s4 + $0x60] sm:$0xff]  ;;  %v1382_v51 = vpack.c.bf16 %v919_v48, %v918_v47  ;;  %v561_v53 = vld [vmem:[#allocation5 + $0x78] sm:$0xff]  ;;  %v920_v54 = vld [vmem:[#allocation5 + $0xf0] sm:$0xff] }
  0x63   : > { %1339 = vmatprep.subr.bf16.mxu1 %v1338_v26  ;;  %1371 = vmatprep.subr.bf16.mxu0 %v1370_v27  ;;  %v921_v55 = vld [vmem:[#allocation5 + $0xf8] sm:$0xff]  ;;  %v1161_v56 = vld [vmem:[%s1756_s4 + $0x28] sm:$0xff]  ;;  %v1354_v58 = vpack.c.bf16 %v561_v53, %v560_v52  ;;  %v1164_v60 = vld [vmem:[%s1756_s4 + $0x30] sm:$0xff] }
  0x64   : > { %1257 = vmatprep.mubr.msk.f32.mxu1 %vm302_vm0, %v289_v30  ;;  %1301 = vmatprep.mubr.msk.f32.mxu0 %vm302_vm0, %v1172_v33  ;;  %v1177_v57 = vld [vmem:[%s1756_s4 + $0x68] sm:$0xff]  ;;  %v1386_v59 = vpack.c.bf16 %v921_v55, %v920_v54  ;;  %v1180_v61 = vld [vmem:[%s1756_s4 + $0x70] sm:$0xff]  ;;  %v1165_v62 = vld [vmem:[%s1756_s4 + $0x38] sm:$0xff] }
  0x65   : > { %v1181_v63 = vld [vmem:[%s1756_s4 + $0x78] sm:$0xff]  ;;  %v1184_v4 = vld [vmem:[%s1829_s2] ss:$0 sm:$0xff] }
  0x66   : > { %1341 = vmatpush3.bf16.msra.mxu1 %v1338_v26  ;;  %1373 = vmatpush3.bf16.msra.mxu0 %v1370_v27  ;;  %v1185_v9 = vld [vmem:[%s1830_s3] ss:$0 sm:$0xff] }
  0x67   : > { %1343 = vmatprep.subr.bf16.mxu1 %v1342_v34  ;;  %1375 = vmatprep.subr.bf16.mxu0 %v1374_v35 }
  0x69   : > { %1258 = vmatmul.mubr.msk.f32.vlgmr.msra.gmra.mrb[0].mxu1 %vm302_vm0, %v290_v40  ;;  %1302 = vmatmul.mubr.msk.f32.vlgmr.msra.gmra.mrb[0].mxu0 %vm302_vm0, %v1173_v41 }
  0x6a   : > { %1345 = vmatpush3.bf16.msra.mxu1 %v1342_v34  ;;  %1377 = vmatpush3.bf16.msra.mxu0 %v1374_v35 }
  0x6b   : > { %1347 = vmatprep.subr.bf16.mxu1 %v1346_v42  ;;  %1379 = vmatprep.subr.bf16.mxu0 %v1378_v43 }
  0x6c   : > { %1268 = vmatprep.mubr.msk.f32.mxu1 %vm302_vm0, %v1160_v46  ;;  %1312 = vmatprep.mubr.msk.f32.mxu0 %vm302_vm0, %v1176_v49 }
  0x6e   : > { %1349 = vmatpush3.bf16.msra.mxu1 %v1346_v42  ;;  %1381 = vmatpush3.bf16.msra.mxu0 %v1378_v43 }
  0x6f   : > { %1351 = vmatprep.subr.bf16.mxu1 %v1350_v50  ;;  %1383 = vmatprep.subr.bf16.mxu0 %v1382_v51 }
  0x71   : > { %1269 = vmatmul.mubr.msk.f32.vlgmr.msra.gmra.mrb[0].mxu1 %vm302_vm0, %v1161_v56  ;;  %1313 = vmatmul.mubr.msk.f32.vlgmr.msra.gmra.mrb[0].mxu0 %vm302_vm0, %v1177_v57 }
  0x72   : > { %1353 = vmatpush3.bf16.msra.mxu1 %v1350_v50  ;;  %1385 = vmatpush3.bf16.msra.mxu0 %v1382_v51 }
  0x73   : > { %1355 = vmatprep.subr.bf16.mxu1 %v1354_v58  ;;  %1387 = vmatprep.subr.bf16.mxu0 %v1386_v59 }
  0x74   : > { %1279 = vmatprep.mubr.msk.f32.mxu1 %vm302_vm0, %v1164_v60  ;;  %1323 = vmatprep.mubr.msk.f32.mxu0 %vm302_vm0, %v1180_v61 }
  0x76   : > { %1357 = vmatpush3.bf16.msra.mxu1 %v1354_v58  ;;  %1389 = vmatpush3.bf16.msra.mxu0 %v1386_v59 }
  0x79   : > { %1280 = vmatmul.mubr.msk.f32.vlgmr.msra.gmra.mrb[0].mxu1 %vm302_vm0, %v1165_v62  ;;  %1324 = vmatmul.mubr.msk.f32.vlgmr.msra.gmra.mrb[0].mxu0 %vm302_vm0, %v1181_v63 }
 0x14c   : > { %v1281_v0 = vpop.f32.mrb[0].mxu1  ;;  %v1325_v1 = vpop.f32.mrb[0].mxu0 }
 0x14d   : > { %v634_v2 = vpop.f32.mrb[1].mxu1  ;;  %v1390_v3 = vadd.f32 %v1325_v1, %v1281_v0  ;;  %v994_v5 = vpop.f32.mrb[1].mxu0 }
 0x14e   : > { %v1391_v6 = vadd.f32 %v994_v5, %v634_v2 }
 0x14f   : > { %v1013_v7 = vadd.f32 %v1390_v3, %v1184_v4 }
 0x150   : > { %v1012_v8 = vadd.f32 %v1391_v6, %v1184_v4 }
 0x151   : > { %v1015_v11 = vmax.f32 %v1013_v7, 0.0 }
 0x152   : > { %v1014_v10 = vmax.f32 %v1012_v8, 0.0 }
 0x153   : > { %v1024_v13 = vmul.f32 %v1185_v9, %v1015_v11 }
 0x154   : > { %v1023_v12 = vmul.f32 %v1185_v9, %v1014_v10 }
 0x156   : > { %1025 = vadd.xlane.f32.xlu0 %v1023_v12 }
 0x15a   : > { %1027 = vadd.xlane.f32.xlu0 %v1024_v13 }
 0x1e3   : > { %v1026_v15 = vpop.xlane.xlu0 %1025 }
 0x1e4   : > { %v1031_v16 = vadd.f32 %v1030_v14, %v1026_v15 }
 0x1e6   : > { %1034 = vst.msk [vmem:[%s287_s15] sm:$0xff] %vm1033_vm1, %v1031_v16 }
 0x1e7   : > { %v1028_v17 = vpop.xlane.xlu0 %1027 }
 0x1e8   : > { %v1032_v18 = vadd.f32 %v1030_v14, %v1028_v17 }
 0x1ea   : > { %1035 = vst.msk [vmem:[%s287_s15 + $0x8] sm:$0xff] %vm1033_vm1, %v1032_v18 }
 0x1eb PF: > { %s20_s25 = sadd.s32 1, %s1584_s25   ;;  %s1845_s20 = smov %s1568_s21 }
 0x1ec   : > { %p17_p1 = scmp.ge.s32.totalorder %s20_s25, 4   ;;  %s1846_s21 = smov %s1572_s22 }
 0x1ed   : > { %s1847_s22 = smov %s1709_s9  ;;  %s1848_s23 = smov %s1580_s24 }
 0x1ee   : > { %s1849_s24 = smov %s1851_s7  ;;  %19 = sbr.rel (!%p17_p1) target bundleno = 7 (0x7), region = 91 }
 0x1f5   :  { %1066 = vsyncpa [#allocation4], 1 }
 0x1f6   :  { %1068 = vsyncpa [#allocation4 + $0x1], 1 }
 0x1f7   :  { %1069 = vsyncpa [#allocation6], 1 }

</bundles_post_ra>
